<compile_context>
chip_gen: v6e
topology: v6e:2x2x1
jax: 0.10.0
libtpu: 0.0.40
codegen_flags: <defaults>
</compile_context>

<pallas_src>
import jax
import jax.numpy as jnp
from jax.experimental import pallas as pl
from jax.experimental.pallas import tpu as pltpu


_MAX_TILE_D = 16384                 # lane-width ceiling (keeps vreg/live-range pressure sane)
_SMALL_INPUT_BYTES = 64 * 1024      # below this, XLA's fused softmax wins


def _pick_vmem_limit_bytes():
    """Generation-gated scoped-VMEM limit: 64 MiB on 128-MiB chips (v5e/v6e),
    32 MiB on 64-MiB chips (v7x) or when the query is unavailable."""
    try:
        phys = pltpu.get_tpu_info().vmem_capacity_bytes
    except Exception:
        phys = None
    if phys is not None and phys >= 100 * 1024 * 1024:
        return 64 * 1024 * 1024
    return 32 * 1024 * 1024


def _stable_softmax_kernel(x_ref, o_ref):
    # Whole reduction axis (dim 0) is resident in this block.
    x = x_ref[...].astype(jnp.float32)
    c = jnp.max(x, axis=0, keepdims=True)            # per-column max   (1, tile_d)
    x_exp = jnp.exp(x - c)                           # stabilized exp   (N, tile_d)
    total = jnp.sum(x_exp, axis=0, keepdims=True)    # per-column sum   (1, tile_d)
    # Approx reciprocal on the small row (EUP vrcp is nearly free), then one
    # Newton refinement (row-sized VPU work) to restore ~full f32 precision.
    inv = pl.reciprocal(total, approx=True)
    inv = inv * (2.0 - total * inv)
    o_ref[...] = (x_exp * inv).astype(o_ref.dtype)   # big op is a VPU multiply


def _choose_tile_d(n, d, itemsize, work_budget):
    """Pick the lane tile: largest multiple of 128 that fits the VMEM budget
    (counting f32 temps), never exceeding D, with an even step count preferred
    on v7x's two TensorCores."""
    if d <= 128:
        return d  # block lane dim == full array dim is always legal

    # Per-lane bytes: input block (2x buffered) + output block (2x buffered)
    # + in-kernel f32 temps (x_exp plus one upcast/diff temp), all N tall.
    per_lane = 2 * 2 * n * itemsize + 2 * n * 4
    cap = (work_budget // per_lane) // 128 * 128
    cap = int(max(128, min(cap, _MAX_TILE_D)))
    # TODO(synk): for very tall N (a single 128-lane column stripe exceeding the
    # budget) switch to a two-pass / online-softmax with an 'arbitrary' grid
    # axis over N instead of clamping to a 128-lane tile.

    # Keep every block's start inside the array; the final block may still be
    # ragged and is handled by Pallas boundary masking.
    d_floor = (d // 128) * 128
    tile_d = min(cap, d_floor)

    # v7x megacore: prefer an even number of grid steps so both TensorCores get
    # equal work. Shrink tile_d by at most 2x to achieve it (neutral on 1-TC
    # v5e/v6e since blocks stay well above the 512-lane roofline knee).
    chunks = pl.cdiv(d, 128)
    g0 = tile_d // 128
    steps = pl.cdiv(chunks, g0)
    if steps > 1 and steps % 2 == 1:
        for g in range(g0 - 1, max(g0 // 2, 0), -1):
            if pl.cdiv(chunks, g) % 2 == 0:
                tile_d = 128 * g
                break
    return tile_d


def stable_softmax_ref(x):
    x32 = x.astype(jnp.float32)
    c = jnp.max(x32, axis=0, keepdims=True)
    x_exp = jnp.exp(x32 - c)
    return (x_exp / jnp.sum(x_exp, axis=0, keepdims=True)).astype(x.dtype)


def stable_softmax(x, *, force_pallas=False):
    """Softmax over axis 0 of a 2-D array, matching torch StableSoftmax."""
    assert x.ndim == 2, "kernel expects a 2-D input (N, D)"
    n, d = x.shape
    itemsize = jnp.dtype(x.dtype).itemsize

    # Small-input fast path: dispatch + per-step overhead exceeds the entire
    # HBM traffic at these sizes; XLA's fused softmax is as fast or faster.
    if not force_pallas and n * d * itemsize < _SMALL_INPUT_BYTES:
        return stable_softmax_ref(x)

    vmem_limit = _pick_vmem_limit_bytes()
    work_budget = int(0.75 * vmem_limit)
    tile_d = _choose_tile_d(n, d, itemsize, work_budget)
    grid = (pl.cdiv(d, tile_d),)

    cost = pl.CostEstimate(
        flops=4 * n * d,
        transcendentals=n * d,
        bytes_accessed=2 * n * d * itemsize,
    )

    return pl.pallas_call(
        _stable_softmax_kernel,
        out_shape=jax.ShapeDtypeStruct((n, d), x.dtype),
        grid_spec=pltpu.PrefetchScalarGridSpec(
            num_scalar_prefetch=0,
            grid=grid,
            in_specs=[pl.BlockSpec((n, tile_d), lambda j: (0, j))],
            out_specs=pl.BlockSpec((n, tile_d), lambda j: (0, j)),
        ),
        compiler_params=pltpu.CompilerParams(
            dimension_semantics=("parallel",),
            vmem_limit_bytes=vmem_limit,
        ),
        cost_estimate=cost,
    )(x)


if __name__ == "__main__":
    key = jax.random.PRNGKey(0)
    k1, k2, k3 = jax.random.split(key, 3)

    # Module-scale shape (seq=8 rows reduced over, hidden=256 cols): exercises
    # the small-input fast path.
    x_small = jax.random.normal(k1, (8, 256), dtype=jnp.float32) * 3.0
    out_small = jax.block_until_ready(stable_softmax(x_small))
    assert out_small.shape == x_small.shape and out_small.dtype == x_small.dtype
    assert jnp.allclose(out_small, stable_softmax_ref(x_small), atol=1e-5, rtol=1e-5)
    assert jnp.allclose(jnp.sum(out_small, axis=0), jnp.ones((256,)), atol=1e-5)

    # Pallas path, 128-multiple D (single wide lane-dense block).
    x_mid = jax.random.normal(k2, (16, 2048), dtype=jnp.float32) * 3.0
    out_mid = jax.block_until_ready(stable_softmax(x_mid, force_pallas=True))
    assert out_mid.shape == x_mid.shape and out_mid.dtype == x_mid.dtype
    assert jnp.allclose(out_mid, stable_softmax_ref(x_mid), atol=1e-5, rtol=1e-5)
    assert jnp.allclose(jnp.sum(out_mid, axis=0), jnp.ones((2048,)), atol=1e-5)

    # Pallas path, ragged D (boundary-masked final block, no pad/slice round trips).
    x_rag = jax.random.normal(k3, (16, 1900), dtype=jnp.float32) * 3.0
    out_rag = jax.block_until_ready(stable_softmax(x_rag, force_pallas=True))
    assert out_rag.shape == x_rag.shape and out_rag.dtype == x_rag.dtype
    assert jnp.allclose(out_rag, stable_softmax_ref(x_rag), atol=1e-5, rtol=1e-5)
    assert jnp.allclose(jnp.sum(out_rag, axis=0), jnp.ones((1900,)), atol=1e-5)

    print("KERNEL_OK")
</pallas_src>

<mosaic_0001>
module attributes {stable_mosaic.version = 11 : i64} {
  func.func @_stable_softmax_kernel(%arg0: i32, %arg1: memref<16x2048xf32, #tpu.memory_space<vmem>>, %arg2: memref<16x2048xf32, #tpu.memory_space<vmem>>) attributes {dimension_semantics = [#tpu.dimension_semantics<parallel>], iteration_bounds = array<i64: 1>, scalar_prefetch = 0 : i64, scratch_operands = 0 : i64, tpu.core_type = #tpu.core_type<tc>, window_params = [{transform_indices = @transform_0, window_bounds = array<i64: 16, 2048>}, {transform_indices = @transform_1, window_bounds = array<i64: 16, 2048>}]} {
    %c0 = arith.constant 0 : index
    %c0_0 = arith.constant 0 : index
    %0 = vector.load %arg1[%c0, %c0_0] : memref<16x2048xf32, #tpu.memory_space<vmem>>, vector<16x2048xf32>
    %cst = arith.constant dense<0xFF800000> : vector<2048xf32>
    %1 = vector.multi_reduction <maximumf>, %0, %cst [0] : vector<16x2048xf32> to vector<2048xf32>
    %2 = vector.shape_cast %1 : vector<2048xf32> to vector<1x2048xf32>
    %3 = vector.broadcast %2 : vector<1x2048xf32> to vector<16x2048xf32>
    %4 = arith.subf %0, %3 : vector<16x2048xf32>
    %5 = math.exp %4 : vector<16x2048xf32>
    %cst_1 = arith.constant dense<0.000000e+00> : vector<2048xf32>
    %6 = vector.multi_reduction <add>, %5, %cst_1 [0] : vector<16x2048xf32> to vector<2048xf32>
    %7 = vector.shape_cast %6 : vector<2048xf32> to vector<1x2048xf32>
    %8 = tpu.reciprocal %7 {approx = true} : vector<1x2048xf32> -> vector<1x2048xf32>
    %9 = arith.mulf %7, %8 : vector<1x2048xf32>
    %cst_2 = arith.constant 2.000000e+00 : f32
    %10 = vector.broadcast %cst_2 : f32 to vector<1x2048xf32>
    %11 = arith.subf %10, %9 : vector<1x2048xf32>
    %12 = arith.mulf %8, %11 : vector<1x2048xf32>
    %13 = vector.broadcast %12 : vector<1x2048xf32> to vector<16x2048xf32>
    %14 = arith.mulf %5, %13 : vector<16x2048xf32>
    %c0_3 = arith.constant 0 : index
    %c0_4 = arith.constant 0 : index
    %15 = vector.load %arg2[%c0_3, %c0_4] : memref<16x2048xf32, #tpu.memory_space<vmem>>, vector<16x2048xf32>
    tpu.vector_store %arg2[%c0_3, %c0_4], %14 {strides = array<i32>} : memref<16x2048xf32, #tpu.memory_space<vmem>>, vector<16x2048xf32>,
    return
  }
  func.func @transform_0(%arg0: i32) -> (i32, i32) {
    %c0_i32 = arith.constant 0 : i32
    %c0_i32_0 = arith.constant 0 : i32
    return %c0_i32, %arg0 : i32, i32
  }
  func.func @transform_1(%arg0: i32) -> (i32, i32) {
    %c0_i32 = arith.constant 0 : i32
    %c0_i32_0 = arith.constant 0 : i32
    return %c0_i32, %arg0 : i32, i32
  }
}

</mosaic_0001>

<bundles_post_ra>
// kernel: tpu_custom_call.1
= control target key start
LH: loop header
LB: loop body
LE: loop exit
PB: predicated region body
PF: predicated region fallthrough
CT: control target
= control target key end

     0   :  { %6 = vsyncpa [#allocation3], 0  ;;  %s1010_s0 = inlined_call_operand.hbm [shape: f32[16,2048], index: 0, kind: input, shape index: {}]   ;;  %s1011_s1 = inlined_call_operand.hbm [shape: f32[16,2048], index: 1, kind: output, shape index: {}]  }
   0x1   :  { %7 = vsyncpa [#allocation4], 0  ;;  %s664_s6 = smov [#allocation2]  }
   0x2   :  { %s13_s7 = sshll.u32 %s664_s6, 4  ;;  %s14_s7 = int_to_ptr.vmem [resolvable:$true] %s13_s7 }
   0x3   :  { %s628_s8 = scalar_lea.vmem %s14_s7, 4096  ;;  %p633_p1 = scmp.lt.s32.totalorder %s14_s7, %s14_s7 }
   0x4   :  { %p629_p0 = scmp.ne.s32.totalorder %s14_s7, %s628_s8  ;;  %p634_p2 = scmp.lt.s32.totalorder %s628_s8, %s628_s8 }
   0x6   :  { %p635_p3 = por %p634_p2, %p633_p1 }
   0x8   :  { %p636_p4 = pnand %p635_p3, %p629_p0 }
   0xa   :  { %639 = shalt.err (!%p636_p4)
}
   0xb   :  { %s665_s9 = smov 2048   ;;  %s666_s10 = smov 128  }
   0xc   :  { %19 = dma.hbm_to_vmem [thread:$0]  %s1010_s0, 4096, %s14_s7, [#allocation3], %s665_s9, %s665_s9, %s666_s10  }
   0xd   :  { %660 = dma.done.wait [#allocation3], 4096  }
   0xe   :  { %661 = vsyncadd [#allocation3], 4294963200  ;;  %v684_v0 = vld [vmem:[#allocation2] sm:$0xff]  ;;  %v688_v2 = vld [vmem:[#allocation2 + $0x8] sm:$0xff]  ;;  %s667_s0 = smov [#allocation5]  }
   0xf   :  { %v686_v1 = vld [vmem:[#allocation2 + $0x80] sm:$0xff]  ;;  %v692_v4 = vld [vmem:[#allocation2 + $0x88] sm:$0xff]  ;;  %v694_v5 = vld [vmem:[#allocation2 + $0x10] sm:$0xff]  ;;  %s508_s13 = sshll.u32 %s667_s0, 4  ;;  %s509_s13 = int_to_ptr.vmem [resolvable:$true] %s508_s13 }
  0x10   :  { %v55_v3 = vmax.f32 %v684_v0, %v686_v1  ;;  %v696_v6 = vld [vmem:[#allocation2 + $0x90] sm:$0xff]  ;;  %v62_v7 = vmax.f32 %v688_v2, %v692_v4  ;;  %v702_v9 = vld [vmem:[#allocation2 + $0x18] sm:$0xff]  ;;  %v706_v11 = vld [vmem:[#allocation2 + $0x20] sm:$0xff]  ;;  %s640_s14 = scalar_lea.vmem %s509_s13, 4096  ;;  %p645_p6 = scmp.lt.s32.totalorder %s509_s13, %s509_s13 }
  0x11   :  { %v69_v8 = vmax.f32 %v694_v5, %v696_v6  ;;  %v704_v10 = vld [vmem:[#allocation2 + $0x98] sm:$0xff]  ;;  %v710_v14 = vld [vmem:[#allocation2 + $0xa0] sm:$0xff]  ;;  %v712_v15 = vld [vmem:[#allocation2 + $0x28] sm:$0xff]  ;;  %p641_p5 = scmp.ne.s32.totalorder %s509_s13, %s640_s14  ;;  %p646_p7 = scmp.lt.s32.totalorder %s640_s14, %s640_s14 }
  0x12   :  { %v56_v12 = vrot.slane %v55_v3, 4  ;;  %v76_v13 = vmax.f32 %v702_v9, %v704_v10  ;;  %v714_v16 = vld [vmem:[#allocation2 + $0xa8] sm:$0xff]  ;;  %v63_v17 = vrot.slane %v62_v7, 4  ;;  %v83_v19 = vmax.f32 %v706_v11, %v710_v14  ;;  %v720_v21 = vld [vmem:[#allocation2 + $0x30] sm:$0xff]  ;;  %v724_v23 = vld [vmem:[#allocation2 + $0x38] sm:$0xff] }
  0x13   :  { %v70_v18 = vrot.slane %v69_v8, 4  ;;  %v90_v20 = vmax.f32 %v712_v15, %v714_v16  ;;  %v722_v22 = vld [vmem:[#allocation2 + $0xb0] sm:$0xff]  ;;  %v728_v27 = vld [vmem:[#allocation2 + $0xb8] sm:$0xff]  ;;  %p647_p8 = por %p646_p7, %p645_p6 }
  0x14   :  { %v57_v24 = vmax.f32 %v55_v3, %v56_v12  ;;  %v77_v25 = vrot.slane %v76_v13, 4  ;;  %v97_v26 = vmax.f32 %v720_v21, %v722_v22  ;;  %v64_v28 = vmax.f32 %v62_v7, %v63_v17 }
  0x15   :  { %v71_v29 = vmax.f32 %v69_v8, %v70_v18  ;;  %v84_v30 = vrot.slane %v83_v19, 4  ;;  %v91_v31 = vrot.slane %v90_v20, 4  ;;  %v104_v35 = vmax.f32 %v724_v23, %v728_v27  ;;  %p648_p9 = pnand %p647_p8, %p641_p5 }
  0x16   :  { %v58_v32 = vrot.slane %v57_v24, 2  ;;  %v78_v33 = vmax.f32 %v76_v13, %v77_v25  ;;  %v98_v34 = vrot.slane %v97_v26, 4  ;;  %v65_v36 = vrot.slane %v64_v28, 2 }
  0x17   :  { %v72_v37 = vrot.slane %v71_v29, 2  ;;  %v85_v38 = vmax.f32 %v83_v19, %v84_v30  ;;  %v92_v39 = vmax.f32 %v90_v20, %v91_v31  ;;  %v105_v43 = vrot.slane %v104_v35, 4 }
  0x18   :  { %v59_v40 = vmax.f32 %v57_v24, %v58_v32  ;;  %v79_v41 = vrot.slane %v78_v33, 2  ;;  %v99_v42 = vmax.f32 %v97_v26, %v98_v34  ;;  %v66_v44 = vmax.f32 %v64_v28, %v65_v36  ;;  %v740_v28 = vld [vmem:[#allocation2 + $0x40] sm:$0xff] }
  0x19   :  { %v73_v45 = vmax.f32 %v71_v29, %v72_v37  ;;  %v86_v46 = vrot.slane %v85_v38, 2  ;;  %v93_v47 = vrot.slane %v92_v39, 2  ;;  %v106_v51 = vmax.f32 %v104_v35, %v105_v43  ;;  %v748_v35 = vld [vmem:[#allocation2 + $0x48] sm:$0xff]  ;;  %v760_v43 = vld [vmem:[#allocation2 + $0x58] sm:$0xff] }
  0x1a   :  { %v60_v48 = vrot.slane %v59_v40, 1  ;;  %v80_v49 = vmax.f32 %v78_v33, %v79_v41  ;;  %v100_v50 = vrot.slane %v99_v42, 2  ;;  %v67_v52 = vrot.slane %v66_v44, 1 }
  0x1b   :  { %v74_v53 = vrot.slane %v73_v45, 1  ;;  %v87_v54 = vmax.f32 %v85_v38, %v86_v46  ;;  %v94_v55 = vmax.f32 %v92_v39, %v93_v47  ;;  %v107_v59 = vrot.slane %v106_v51, 2  ;;  %v751_v39 = vld [vmem:[#allocation2 + $0xc8] sm:$0xff]  ;;  %v764_v47 = vld [vmem:[#allocation2 + $0x60] sm:$0xff] }
  0x1c   :  { %v61_v56 = vmax.f32 %v59_v40, %v60_v48  ;;  %v81_v57 = vrot.slane %v80_v49, 1  ;;  %v101_v58 = vmax.f32 %v99_v42, %v100_v50  ;;  %v68_v60 = vmax.f32 %v66_v44, %v67_v52  ;;  %v753_v40 = vld [vmem:[#allocation2 + $0x50] sm:$0xff]  ;;  %v762_v44 = vld [vmem:[#allocation2 + $0xd8] sm:$0xff]  ;;  %v766_v48 = vld [vmem:[#allocation2 + $0xe0] sm:$0xff] }
  0x1d   :  { %v75_v61 = vmax.f32 %v73_v45, %v74_v53  ;;  %v88_v62 = vrot.slane %v87_v54, 1  ;;  %v95_v63 = vrot.slane %v94_v55, 1  ;;  %v108_v33 = vmax.f32 %v106_v51, %v107_v59  ;;  %v758_v42 = vld [vmem:[#allocation2 + $0xd0] sm:$0xff] }
  0x1e   :  { %v167_v3 = vsub.f32 %v684_v0, %v61_v56  ;;  %v183_v7 = vsub.f32 %v686_v1, %v61_v56  ;;  %v82_v8 = vmax.f32 %v80_v49, %v81_v57  ;;  %v102_v12 = vrot.slane %v101_v58, 1  ;;  %v742_v0 = vld [vmem:[#allocation2 + $0xc0] sm:$0xff] }
  0x1f   :  { %v168_v13 = vsub.f32 %v688_v2, %v68_v60  ;;  %v184_v17 = vsub.f32 %v692_v4, %v68_v60  ;;  %v169_v18 = vsub.f32 %v694_v5, %v75_v61  ;;  %v185_v19 = vsub.f32 %v696_v6, %v75_v61  ;;  %v778_v61 = vld [vmem:[#allocation2 + $0x68] sm:$0xff] }
  0x20   :  { %v199_v20 = vmul.f32 1.442695, %v167_v3  ;;  %v231_v24 = vmul.f32 1.442695, %v183_v7  ;;  %v170_v25 = vsub.f32 %v702_v9, %v82_v8  ;;  %v186_v26 = vsub.f32 %v704_v10, %v82_v8 }
  0x21   :  { %v201_v1 = vmul.f32 1.442695, %v168_v13  ;;  %v233_v29 = vmul.f32 1.442695, %v184_v17  ;;  %v203_v30 = vmul.f32 1.442695, %v169_v18  ;;  %v89_v2 = vmax.f32 %v87_v54, %v88_v62 }
  0x22   :  { %524 = vpow2.f32 %v199_v20  ;;  %v235_v4 = vmul.f32 1.442695, %v185_v19  ;;  %v205_v31 = vmul.f32 1.442695, %v170_v25  ;;  %v237_v5 = vmul.f32 1.442695, %v186_v26 }
  0x23   :  { %526 = vpow2.f32 %v231_v24  ;;  %v171_v6 = vsub.f32 %v706_v11, %v89_v2  ;;  %v187_v32 = vsub.f32 %v710_v14, %v89_v2  ;;  %v96_v9 = vmax.f32 %v94_v55, %v95_v63  ;;  %v780_v62 = vld [vmem:[#allocation2 + $0xe8] sm:$0xff] }
  0x24   :  { %528 = vpow2.f32 %v201_v1  ;;  %v103_v10 = vmax.f32 %v101_v58, %v102_v12  ;;  %v111_v34 = vmax.f32 %v740_v28, %v742_v0  ;;  %v118_v51 = vmax.f32 %v748_v35, %v751_v39 }
  0x25   :  { %530 = vpow2.f32 %v233_v29  ;;  %v207_v36 = vmul.f32 1.442695, %v171_v6  ;;  %v239_v37 = vmul.f32 1.442695, %v187_v32  ;;  %v172_v38 = vsub.f32 %v712_v15, %v96_v9 }
  0x26   :  { %532 = vpow2.f32 %v203_v30  ;;  %v188_v11 = vsub.f32 %v714_v16, %v96_v9  ;;  %v173_v14 = vsub.f32 %v720_v21, %v103_v10  ;;  %v189_v41 = vsub.f32 %v722_v22, %v103_v10 }
  0x27   :  { %534 = vpow2.f32 %v235_v4  ;;  %v209_v45 = vmul.f32 1.442695, %v172_v38  ;;  %v109_v15 = vrot.slane %v108_v33, 1  ;;  %v112_v46 = vrot.slane %v111_v34, 4 }
  0x28   :  { %536 = vpow2.f32 %v205_v31  ;;  %v241_v16 = vmul.f32 1.442695, %v188_v11  ;;  %v211_v49 = vmul.f32 1.442695, %v173_v14  ;;  %v243_v21 = vmul.f32 1.442695, %v189_v41 }
  0x29   :  { %538 = vpow2.f32 %v237_v5  ;;  %v110_v22 = vmax.f32 %v108_v33, %v109_v15  ;;  %v113_v50 = vmax.f32 %v111_v34, %v112_v46  ;;  %v125_v52 = vmax.f32 %v753_v40, %v758_v42 }
  0x2a   :  { %540 = vpow2.f32 %v207_v36  ;;  %v132_v53 = vmax.f32 %v760_v43, %v762_v44  ;;  %v139_v54 = vmax.f32 %v764_v47, %v766_v48  ;;  %v119_v58 = vrot.slane %v118_v51, 4 }
  0x2b   :  { %542 = vpow2.f32 %v239_v37  ;;  %v174_v55 = vsub.f32 %v724_v23, %v110_v22  ;;  %v190_v56 = vsub.f32 %v728_v27, %v110_v22  ;;  %v114_v57 = vrot.slane %v113_v50, 2 }
  0x2c   :  { %544 = vpow2.f32 %v209_v45  ;;  %v126_v59 = vrot.slane %v125_v52, 4  ;;  %v133_v60 = vrot.slane %v132_v53, 4  ;;  %v120_v8 = vmax.f32 %v118_v51, %v119_v58 }
  0x2d   :  { %546 = vpow2.f32 %v241_v16  ;;  %v213_v63 = vmul.f32 1.442695, %v174_v55  ;;  %v245_v3 = vmul.f32 1.442695, %v190_v56  ;;  %v115_v7 = vmax.f32 %v113_v50, %v114_v57 }
  0x2e   :  { %548 = vpow2.f32 %v211_v49  ;;  %v127_v12 = vmax.f32 %v125_v52, %v126_v59  ;;  %v134_v13 = vmax.f32 %v132_v53, %v133_v60  ;;  %v140_v17 = vrot.slane %v139_v54, 4 }
  0x2f   :  { %v782_v23 = vpop.eup %524  ;;  %550 = vpow2.f32 %v243_v21  ;;  %v116_v27 = vrot.slane %v115_v7, 1  ;;  %v786_v18 = vmax.f32 %v778_v61, %v780_v62  ;;  %v121_v20 = vrot.slane %v120_v8, 2 }
  0x30   :  { %v788_v19 = vpop.eup %526  ;;  %552 = vpow2.f32 %v213_v63  ;;  %v128_v24 = vrot.slane %v127_v12, 2  ;;  %v135_v25 = vrot.slane %v134_v13, 2  ;;  %v794_v30 = vmax.f32 %v139_v54, %v140_v17 }
  0x31   :  { %v790_v26 = vpop.eup %528  ;;  %v263_v1 = vadd.f32 %v788_v19, %v782_v23  ;;  %554 = vpow2.f32 %v245_v3  ;;  %v117_v29 = vmax.f32 %v115_v7, %v116_v27  ;;  %v122_v4 = vmax.f32 %v120_v8, %v121_v20 }
  0x32   :  { %v796_v2 = vpop.eup %530  ;;  %v129_v31 = vmax.f32 %v127_v12, %v128_v24  ;;  %v136_v5 = vmax.f32 %v134_v13, %v135_v25  ;;  %v147_v6 = vrot.slane %v786_v18, 4  ;;  %v142_v14 = vrot.slane %v794_v30, 2 }
  0x33   :  { %v799_v32 = vpop.eup %532  ;;  %v264_v9 = vrot.slane %v263_v1, 4  ;;  %v270_v10 = vadd.f32 %v796_v2, %v790_v26  ;;  %v175_v33 = vsub.f32 %v740_v28, %v117_v29  ;;  %v191_v34 = vsub.f32 %v742_v0, %v117_v29 }
  0x34   :  { %v805_v36 = vpop.eup %534  ;;  %v123_v37 = vrot.slane %v122_v4, 1  ;;  %v130_v38 = vrot.slane %v129_v31, 1  ;;  %v137_v11 = vrot.slane %v136_v5, 1 }
  0x35   :  { %v808_v41 = vpop.eup %536  ;;  %v265_v45 = vadd.f32 %v264_v9, %v263_v1  ;;  %v271_v15 = vrot.slane %v270_v10, 4  ;;  %v277_v46 = vadd.f32 %v805_v36, %v799_v32  ;;  %v215_v16 = vmul.f32 1.442695, %v175_v33 }
  0x36   :  { %v812_v49 = vpop.eup %538  ;;  %v247_v28 = vmul.f32 1.442695, %v191_v34  ;;  %v124_v21 = vmax.f32 %v122_v4, %v123_v37  ;;  %v131_v0 = vmax.f32 %v129_v31, %v130_v38  ;;  %v814_v22 = vmax.f32 %v136_v5, %v137_v11 }
  0x37   :  { %v816_v50 = vpop.eup %540  ;;  %v266_v51 = vrot.slane %v265_v45, 2  ;;  %v272_v52 = vadd.f32 %v271_v15, %v270_v10  ;;  %v278_v53 = vrot.slane %v277_v46, 4  ;;  %v284_v54 = vadd.f32 %v812_v49, %v808_v41 }
  0x38   :  { %v820_v55 = vpop.eup %542  ;;  %556 = vpow2.f32 %v215_v16  ;;  %v176_v56 = vsub.f32 %v748_v35, %v124_v21  ;;  %v192_v57 = vsub.f32 %v751_v39, %v124_v21  ;;  %v177_v58 = vsub.f32 %v753_v40, %v131_v0 }
  0x39   :  { %v825_v59 = vpop.eup %544  ;;  %v267_v60 = vadd.f32 %v266_v51, %v265_v45  ;;  %v273_v63 = vrot.slane %v272_v52, 2  ;;  %v279_v3 = vadd.f32 %v278_v53, %v277_v46  ;;  %v285_v7 = vrot.slane %v284_v54, 4 }
  0x3a   :  { %v827_v8 = vpop.eup %546  ;;  %v291_v12 = vadd.f32 %v820_v55, %v816_v50  ;;  %558 = vpow2.f32 %v247_v28  ;;  %v217_v13 = vmul.f32 1.442695, %v176_v56  ;;  %v249_v27 = vmul.f32 1.442695, %v192_v57 }
  0x3b   :  { %v831_v17 = vpop.eup %548  ;;  %v268_v35 = vrot.slane %v267_v60, 1  ;;  %v274_v39 = vadd.f32 %v273_v63, %v272_v52  ;;  %v280_v20 = vrot.slane %v279_v3, 2  ;;  %v286_v40 = vadd.f32 %v285_v7, %v284_v54 }
  0x3c   :  { %v833_v24 = vpop.eup %550  ;;  %v292_v25 = vrot.slane %v291_v12, 4  ;;  %v298_v1 = vadd.f32 %v827_v8, %v825_v59  ;;  %560 = vpow2.f32 %v217_v13  ;;  %v193_v29 = vsub.f32 %v758_v42, %v131_v0 }
  0x3d   :  { %v838_v4 = vpop.eup %552  ;;  %v840_v31 = vadd.f32 %v268_v35, %v267_v60  ;;  %v275_v5 = vrot.slane %v274_v39, 1  ;;  %v281_v9 = vadd.f32 %v280_v20, %v279_v3  ;;  %v287_v10 = vrot.slane %v286_v40, 2 }
  0x3e   :  { %v842_v33 = vpop.eup %554  ;;  %v293_v34 = vadd.f32 %v292_v25, %v291_v12  ;;  %v299_v37 = vrot.slane %v298_v1, 4  ;;  %v305_v38 = vadd.f32 %v833_v24, %v831_v17  ;;  %562 = vpow2.f32 %v249_v27 }
  0x3f   :  { %564 = vrcp.f32 %v840_v31  ;;  %v847_v11 = vadd.f32 %v275_v5, %v274_v39  ;;  %v282_v42 = vrot.slane %v281_v9, 1  ;;  %v288_v45 = vadd.f32 %v287_v10, %v286_v40 }
  0x40   :  { %v294_v15 = vrot.slane %v293_v34, 2  ;;  %v300_v46 = vadd.f32 %v299_v37, %v298_v1  ;;  %v306_v16 = vrot.slane %v305_v38, 4  ;;  %v312_v28 = vadd.f32 %v842_v33, %v838_v4 }
  0x41   :  { %566 = vrcp.f32 %v847_v11  ;;  %v852_v21 = vadd.f32 %v282_v42, %v281_v9  ;;  %v289_v0 = vrot.slane %v288_v45, 1  ;;  %v219_v51 = vmul.f32 1.442695, %v177_v58 }
  0x42   :  { %v295_v52 = vadd.f32 %v294_v15, %v293_v34  ;;  %v301_v53 = vrot.slane %v300_v46, 2  ;;  %v307_v54 = vadd.f32 %v306_v16, %v305_v38  ;;  %v313_v56 = vrot.slane %v312_v28, 4 }
  0x43   :  { %568 = vrcp.f32 %v852_v21  ;;  %v855_v57 = vadd.f32 %v289_v0, %v288_v45  ;;  %v251_v60 = vmul.f32 1.442695, %v193_v29  ;;  %v178_v63 = vsub.f32 %v760_v43, %v814_v22 }
  0x44   :  { %v296_v3 = vrot.slane %v295_v52, 1  ;;  %v302_v7 = vadd.f32 %v301_v53, %v300_v46  ;;  %v308_v12 = vrot.slane %v307_v54, 2  ;;  %v314_v13 = vadd.f32 %v313_v56, %v312_v28 }
  0x45   :  { %v859_v27 = vpop.eup %556  ;;  %570 = vrcp.f32 %v855_v57  ;;  %v194_v58 = vsub.f32 %v762_v44, %v814_v22  ;;  %v221_v35 = vmul.f32 1.442695, %v178_v63  ;;  %v143_v39 = vmax.f32 %v794_v30, %v142_v14  ;;  %v874_v44 = vld [vmem:[#allocation2 + $0x70] sm:$0xff] }
  0x46   :  { %v867_v20 = vadd.f32 %v296_v3, %v295_v52  ;;  %v303_v40 = vrot.slane %v302_v7, 1  ;;  %v309_v43 = vadd.f32 %v308_v12, %v307_v54  ;;  %v315_v25 = vrot.slane %v314_v13, 2  ;;  %v876_v22 = vld [vmem:[#allocation2 + $0xf0] sm:$0xff] }
  0x47   :  { %v869_v1 = vpop.eup %558  ;;  %572 = vpow2.f32 %v219_v51  ;;  %v253_v29 = vmul.f32 1.442695, %v194_v58  ;;  %v144_v5 = vrot.slane %v143_v39, 1  ;;  %v148_v9 = vmax.f32 %v786_v18, %v147_v6 }
  0x48   :  { %574 = vrcp.f32 %v867_v20  ;;  %v879_v30 = vadd.f32 %v303_v40, %v302_v7  ;;  %v310_v14 = vrot.slane %v309_v43, 1  ;;  %v316_v10 = vadd.f32 %v315_v25, %v314_v13 }
  0x49   :  { %v881_v34 = vpop.eup %560  ;;  %v319_v37 = vadd.f32 %v869_v1, %v859_v27  ;;  %576 = vpow2.f32 %v251_v60  ;;  %v145_v38 = vmax.f32 %v143_v39, %v144_v5  ;;  %v149_v42 = vrot.slane %v148_v9, 2 }
  0x4a   :  { %578 = vrcp.f32 %v879_v30  ;;  %v886_v18 = vadd.f32 %v310_v14, %v309_v43  ;;  %v317_v6 = vrot.slane %v316_v10, 1  ;;  %v153_v45 = vmax.f32 %v874_v44, %v876_v22 }
  0x4b   :  { %v890_v15 = vpop.eup %562  ;;  %v320_v46 = vrot.slane %v319_v37, 4  ;;  %580 = vpow2.f32 %v221_v35  ;;  %v179_v16 = vsub.f32 %v764_v47, %v145_v38  ;;  %v195_v28 = vsub.f32 %v766_v48, %v145_v38 }
  0x4c   :  { %v565_v0 = vpop.eup %564  ;;  %582 = vrcp.f32 %v886_v18  ;;  %v895_v51 = vadd.f32 %v317_v6, %v316_v10  ;;  %v326_v52 = vadd.f32 %v890_v15, %v881_v34  ;;  %v150_v53 = vmax.f32 %v148_v9, %v149_v42 }
  0x4d   :  { %v391_v54 = vmul.f32 %v565_v0, %v840_v31  ;;  %v321_v56 = vadd.f32 %v320_v46, %v319_v37  ;;  %584 = vpow2.f32 %v253_v29  ;;  %v223_v60 = vmul.f32 1.442695, %v179_v16 }
  0x4e   :  { %v567_v63 = vpop.eup %566  ;;  %586 = vrcp.f32 %v895_v51  ;;  %v327_v47 = vrot.slane %v326_v52, 4  ;;  %v255_v3 = vmul.f32 1.442695, %v195_v28  ;;  %v151_v48 = vrot.slane %v150_v53, 1 }
  0x4f   :  { %v407_v7 = vsub.f32 2.0, %v391_v54  ;;  %v392_v12 = vmul.f32 %v567_v63, %v847_v11  ;;  %v322_v13 = vrot.slane %v321_v56, 2  ;;  %588 = vpow2.f32 %v223_v60  ;;  %v923_v60 = vld [vmem:[#allocation2 + $0x78] sm:$0xff] }
  0x50   :  { %v569_v58 = vpop.eup %568  ;;  %v328_v35 = vadd.f32 %v327_v47, %v326_v52  ;;  %590 = vpow2.f32 %v255_v3  ;;  %v152_v39 = vmax.f32 %v150_v53, %v151_v48  ;;  %v154_v40 = vrot.slane %v153_v45, 4 }
  0x51   :  { %v902_v31 = vmul.f32 %v565_v0, %v407_v7  ;;  %v408_v43 = vsub.f32 2.0, %v392_v12  ;;  %v393_v25 = vmul.f32 %v569_v58, %v852_v21  ;;  %v323_v29 = vadd.f32 %v322_v13, %v321_v56 }
  0x52   :  { %v571_v5 = vpop.eup %570  ;;  %v329_v9 = vrot.slane %v328_v35, 2  ;;  %v180_v14 = vsub.f32 %v778_v61, %v152_v39  ;;  %v196_v10 = vsub.f32 %v780_v62, %v152_v39  ;;  %v155_v11 = vmax.f32 %v153_v45, %v154_v40 }
  0x53   :  { %v439_v37 = vmul.f32 %v782_v23, %v902_v31  ;;  %v909_v38 = vmul.f32 %v567_v63, %v408_v43  ;;  %v409_v42 = vsub.f32 2.0, %v393_v25  ;;  %v394_v6 = vmul.f32 %v571_v5, %v855_v57  ;;  %v925_v63 = vld [vmem:[#allocation2 + $0xf8] sm:$0xff] }
  0x54   :  { %v912_v46 = vpop.eup %572  ;;  %v324_v16 = vrot.slane %v323_v29, 1  ;;  %v330_v21 = vadd.f32 %v329_v9, %v328_v35  ;;  %v225_v28 = vmul.f32 1.442695, %v180_v14  ;;  %v257_v0 = vmul.f32 1.442695, %v196_v10 }
  0x55   :  { %v575_v52 = vpop.eup %574  ;;  %471 = vst [vmem:[#allocation5] sm:$0xff] %v439_v37  ;;  %v440_v61 = vmul.f32 %v790_v26, %v909_v38  ;;  %v916_v62 = vmul.f32 %v569_v58, %v409_v42  ;;  %v410_v45 = vsub.f32 2.0, %v394_v6  ;;  %v156_v23 = vrot.slane %v155_v11, 2 }
  0x56   :  { %v918_v53 = vpop.eup %576  ;;  %v395_v54 = vmul.f32 %v575_v52, %v867_v20  ;;  %v921_v57 = vadd.f32 %v324_v16, %v323_v29  ;;  %v331_v56 = vrot.slane %v330_v21, 1  ;;  %592 = vpow2.f32 %v225_v28 }
  0x57   :  { %v579_v47 = vpop.eup %578  ;;  %472 = vst [vmem:[#allocation5 + $0x8] sm:$0xff] %v440_v61  ;;  %v441_v26 = vmul.f32 %v799_v32, %v916_v62  ;;  %v929_v3 = vmul.f32 %v571_v5, %v410_v45  ;;  %v333_v48 = vadd.f32 %v918_v53, %v912_v46  ;;  %594 = vpow2.f32 %v257_v0 }
  0x58   :  { %v933_v20 = vpop.eup %580  ;;  %v411_v7 = vsub.f32 2.0, %v395_v54  ;;  %v396_v12 = vmul.f32 %v579_v47, %v879_v30  ;;  %596 = vrcp.f32 %v921_v57  ;;  %v937_v13 = vadd.f32 %v331_v56, %v330_v21 }
  0x59   :  { %v583_v58 = vpop.eup %582  ;;  %473 = vst [vmem:[#allocation5 + $0x10] sm:$0xff] %v441_v26  ;;  %v442_v32 = vmul.f32 %v808_v41, %v929_v3  ;;  %v334_v35 = vrot.slane %v333_v48, 4  ;;  %v157_v39 = vmax.f32 %v155_v11, %v156_v23  ;;  %v160_v40 = vmax.f32 %v923_v60, %v925_v63 }
  0x5a   :  { %v943_v43 = vpop.eup %584  ;;  %v945_v25 = vmul.f32 %v575_v52, %v411_v7  ;;  %v412_v29 = vsub.f32 2.0, %v396_v12  ;;  %v397_v30 = vmul.f32 %v583_v58, %v886_v18  ;;  %598 = vrcp.f32 %v937_v13 }
  0x5b   :  { %v587_v5 = vpop.eup %586  ;;  %474 = vst [vmem:[#allocation5 + $0x18] sm:$0xff] %v442_v32  ;;  %v335_v9 = vadd.f32 %v334_v35, %v333_v48  ;;  %v340_v41 = vadd.f32 %v943_v43, %v933_v20  ;;  %v158_v14 = vrot.slane %v157_v39, 1  ;;  %v161_v10 = vrot.slane %v160_v40, 4 }
  0x5c   :  { %v951_v11 = vpop.eup %588  ;;  %v443_v37 = vmul.f32 %v816_v50, %v945_v25  ;;  %v428_v42 = vmul.f32 %v579_v47, %v412_v29  ;;  %v413_v6 = vsub.f32 2.0, %v397_v30  ;;  %v398_v16 = vmul.f32 %v587_v5, %v895_v51 }
  0x5d   :  { %v956_v18 = vpop.eup %590  ;;  %v336_v21 = vrot.slane %v335_v9, 2  ;;  %v341_v28 = vrot.slane %v340_v41, 4  ;;  %v159_v0 = vmax.f32 %v157_v39, %v158_v14  ;;  %v162_v52 = vmax.f32 %v160_v40, %v161_v10 }
  0x5e   :  { %475 = vst [vmem:[#allocation5 + $0x20] sm:$0xff] %v443_v37  ;;  %v444_v61 = vmul.f32 %v825_v59, %v428_v42  ;;  %v429_v45 = vmul.f32 %v583_v58, %v413_v6  ;;  %v414_v23 = vsub.f32 2.0, %v398_v16  ;;  %v347_v54 = vadd.f32 %v956_v18, %v951_v11 }
  0x5f   :  { %v337_v56 = vadd.f32 %v336_v21, %v335_v9  ;;  %v342_v50 = vadd.f32 %v341_v28, %v340_v41  ;;  %v181_v47 = vsub.f32 %v874_v44, %v159_v0  ;;  %v197_v51 = vsub.f32 %v876_v22, %v159_v0 }
  0x60   :  { %476 = vst [vmem:[#allocation5 + $0x28] sm:$0xff] %v444_v61  ;;  %v445_v26 = vmul.f32 %v831_v17, %v429_v45  ;;  %v430_v48 = vmul.f32 %v587_v5, %v414_v23  ;;  %v348_v7 = vrot.slane %v347_v54, 4  ;;  %v163_v12 = vrot.slane %v162_v52, 2 }
  0x61   :  { %v338_v32 = vrot.slane %v337_v56, 1  ;;  %v343_v35 = vrot.slane %v342_v50, 2  ;;  %v227_v59 = vmul.f32 1.442695, %v181_v47  ;;  %v259_v58 = vmul.f32 1.442695, %v197_v51 }
  0x62   :  { %477 = vst [vmem:[#allocation5 + $0x30] sm:$0xff] %v445_v26  ;;  %v446_v39 = vmul.f32 %v838_v4, %v430_v48  ;;  %v349_v40 = vadd.f32 %v348_v7, %v347_v54  ;;  %v164_v29 = vmax.f32 %v162_v52, %v163_v12  ;;  %v455_v44 = vmul.f32 %v788_v19, %v902_v31 }
  0x63   :  { %v967_v30 = vpop.eup %592  ;;  %v969_v22 = vadd.f32 %v338_v32, %v337_v56  ;;  %v344_v17 = vadd.f32 %v343_v35, %v342_v50  ;;  %600 = vpow2.f32 %v227_v59  ;;  %v456_v5 = vmul.f32 %v796_v2, %v909_v38 }
  0x64   :  { %v973_v9 = vpop.eup %594  ;;  %478 = vst [vmem:[#allocation5 + $0x38] sm:$0xff] %v446_v39  ;;  %v350_v41 = vrot.slane %v349_v40, 2  ;;  %602 = vpow2.f32 %v259_v58  ;;  %v165_v4 = vrot.slane %v164_v29, 1  ;;  %487 = vst [vmem:[#allocation5 + $0x80] sm:$0xff] %v455_v44  ;;  %v457_v14 = vmul.f32 %v805_v36, %v916_v62 }
  0x65   :  { %v597_v19 = vpop.eup %596  ;;  %604 = vrcp.f32 %v969_v22  ;;  %v345_v31 = vrot.slane %v344_v17, 1  ;;  %v354_v10 = vadd.f32 %v973_v9, %v967_v30  ;;  %488 = vst [vmem:[#allocation5 + $0x88] sm:$0xff] %v456_v5  ;;  %v458_v2 = vmul.f32 %v812_v49, %v929_v3 }
  0x66   :  { %v399_v38 = vmul.f32 %v597_v19, %v921_v57  ;;  %v351_v37 = vadd.f32 %v350_v41, %v349_v40  ;;  %v166_v6 = vmax.f32 %v164_v29, %v165_v4  ;;  %489 = vst [vmem:[#allocation5 + $0x90] sm:$0xff] %v457_v14  ;;  %v459_v16 = vmul.f32 %v820_v55, %v945_v25 }
  0x67   :  { %v599_v36 = vpop.eup %598  ;;  %v346_v62 = vadd.f32 %v345_v31, %v344_v17  ;;  %v355_v21 = vrot.slane %v354_v10, 4  ;;  %490 = vst [vmem:[#allocation5 + $0x98] sm:$0xff] %v458_v2  ;;  %v460_v28 = vmul.f32 %v827_v8, %v428_v42  ;;  %v461_v0 = vmul.f32 %v833_v24, %v429_v45 }
  0x68   :  { %v415_v52 = vsub.f32 2.0, %v399_v38  ;;  %v400_v61 = vmul.f32 %v599_v36, %v937_v13  ;;  %v352_v49 = vrot.slane %v351_v37, 1  ;;  %v182_v57 = vsub.f32 %v923_v60, %v166_v6  ;;  %491 = vst [vmem:[#allocation5 + $0xa0] sm:$0xff] %v459_v16 }
  0x69   :  { %606 = vrcp.f32 %v346_v62  ;;  %v356_v3 = vadd.f32 %v355_v21, %v354_v10  ;;  %v198_v23 = vsub.f32 %v925_v63, %v166_v6  ;;  %492 = vst [vmem:[#allocation5 + $0xa8] sm:$0xff] %v460_v28  ;;  %493 = vst [vmem:[#allocation5 + $0xb0] sm:$0xff] %v461_v0  ;;  %v462_v55 = vmul.f32 %v842_v33, %v430_v48 }
  0x6a   :  { %v431_v25 = vmul.f32 %v597_v19, %v415_v52  ;;  %v416_v54 = vsub.f32 2.0, %v400_v61  ;;  %v353_v8 = vadd.f32 %v352_v49, %v351_v37  ;;  %v229_v42 = vmul.f32 1.442695, %v182_v57 }
  0x6b   :  { %v357_v24 = vrot.slane %v356_v3, 2  ;;  %v261_v45 = vmul.f32 1.442695, %v198_v23  ;;  %494 = vst [vmem:[#allocation5 + $0xb8] sm:$0xff] %v462_v55 }
  0x6c   :  { %v447_v13 = vmul.f32 %v859_v27, %v431_v25  ;;  %v432_v56 = vmul.f32 %v599_v36, %v416_v54  ;;  %608 = vrcp.f32 %v353_v8  ;;  %v463_v60 = vmul.f32 %v869_v1, %v431_v25 }
  0x6d   :  { %v358_v50 = vadd.f32 %v357_v24, %v356_v3  ;;  %610 = vpow2.f32 %v229_v42 }
  0x6e   :  { %479 = vst [vmem:[#allocation5 + $0x40] sm:$0xff] %v447_v13  ;;  %v448_v63 = vmul.f32 %v881_v34, %v432_v56  ;;  %612 = vpow2.f32 %v261_v45  ;;  %495 = vst [vmem:[#allocation5 + $0xc0] sm:$0xff] %v463_v60  ;;  %v464_v33 = vmul.f32 %v890_v15, %v432_v56 }
  0x6f   :  { %v359_v47 = vrot.slane %v358_v50, 1 }
  0x70   :  { %v601_v51 = vpop.eup %600  ;;  %480 = vst [vmem:[#allocation5 + $0x48] sm:$0xff] %v448_v63  ;;  %496 = vst [vmem:[#allocation5 + $0xc8] sm:$0xff] %v464_v33 }
  0x71   :  { %v603_v26 = vpop.eup %602  ;;  %v360_v48 = vadd.f32 %v359_v47, %v358_v50 }
  0x72   :  { %v605_v27 = vpop.eup %604  ;;  %v361_v7 = vadd.f32 %v603_v26, %v601_v51 }
  0x73   :  { %v401_v12 = vmul.f32 %v605_v27, %v969_v22  ;;  %614 = vrcp.f32 %v360_v48 }
  0x74   :  { %v362_v1 = vrot.slane %v361_v7, 4 }
  0x75   :  { %v417_v32 = vsub.f32 2.0, %v401_v12 }
  0x76   :  { %v607_v35 = vpop.eup %606  ;;  %v363_v59 = vadd.f32 %v362_v1, %v361_v7 }
  0x77   :  { %v433_v34 = vmul.f32 %v605_v27, %v417_v32  ;;  %v402_v58 = vmul.f32 %v607_v35, %v346_v62 }
  0x78   :  { %v364_v39 = vrot.slane %v363_v59, 2 }
  0x79   :  { %v609_v40 = vpop.eup %608  ;;  %v449_v15 = vmul.f32 %v912_v46, %v433_v34  ;;  %v418_v29 = vsub.f32 2.0, %v402_v58  ;;  %v465_v44 = vmul.f32 %v918_v53, %v433_v34 }
  0x7a   :  { %v611_v17 = vpop.eup %610  ;;  %v403_v5 = vmul.f32 %v609_v40, %v353_v8  ;;  %v365_v41 = vadd.f32 %v364_v39, %v363_v59 }
  0x7b   :  { %v613_v4 = vpop.eup %612  ;;  %481 = vst [vmem:[#allocation5 + $0x50] sm:$0xff] %v449_v15  ;;  %v434_v22 = vmul.f32 %v607_v35, %v418_v29  ;;  %497 = vst [vmem:[#allocation5 + $0xd0] sm:$0xff] %v465_v44 }
  0x7c   :  { %v419_v14 = vsub.f32 2.0, %v403_v5  ;;  %v366_v19 = vrot.slane %v365_v41, 1  ;;  %v368_v31 = vadd.f32 %v613_v4, %v611_v17 }
  0x7d   :  { %v450_v10 = vmul.f32 %v933_v20, %v434_v22  ;;  %v466_v2 = vmul.f32 %v943_v43, %v434_v22 }
  0x7e   :  { %v435_v38 = vmul.f32 %v609_v40, %v419_v14  ;;  %v367_v37 = vadd.f32 %v366_v19, %v365_v41  ;;  %v369_v46 = vrot.slane %v368_v31, 4 }
  0x7f   :  { %482 = vst [vmem:[#allocation5 + $0x58] sm:$0xff] %v450_v10  ;;  %498 = vst [vmem:[#allocation5 + $0xd8] sm:$0xff] %v466_v2 }
  0x80   :  { %v615_v53 = vpop.eup %614  ;;  %v451_v6 = vmul.f32 %v951_v11, %v435_v38  ;;  %616 = vrcp.f32 %v367_v37  ;;  %v370_v16 = vadd.f32 %v369_v46, %v368_v31  ;;  %v467_v36 = vmul.f32 %v956_v18, %v435_v38 }
  0x81   :  { %v404_v62 = vmul.f32 %v615_v53, %v360_v48 }
  0x82   :  { %483 = vst [vmem:[#allocation5 + $0x60] sm:$0xff] %v451_v6  ;;  %v371_v21 = vrot.slane %v370_v16, 2  ;;  %499 = vst [vmem:[#allocation5 + $0xe0] sm:$0xff] %v467_v36 }
  0x83   :  { %v420_v28 = vsub.f32 2.0, %v404_v62 }
  0x84   :  { %v372_v20 = vadd.f32 %v371_v21, %v370_v16 }
  0x85   :  { %v436_v0 = vmul.f32 %v615_v53, %v420_v28 }
  0x86   :  { %v373_v43 = vrot.slane %v372_v20, 1 }
  0x87   :  { %v452_v52 = vmul.f32 %v967_v30, %v436_v0  ;;  %v468_v61 = vmul.f32 %v973_v9, %v436_v0 }
  0x88   :  { %v374_v49 = vadd.f32 %v373_v43, %v372_v20 }
  0x89   :  { %484 = vst [vmem:[#allocation5 + $0x68] sm:$0xff] %v452_v52  ;;  %500 = vst [vmem:[#allocation5 + $0xe8] sm:$0xff] %v468_v61 }
  0x8a   :  { %618 = vrcp.f32 %v374_v49 }
  0x8d   :  { %v617_v11 = vpop.eup %616 }
  0x8e   :  { %v405_v57 = vmul.f32 %v617_v11, %v367_v37 }
  0x90   :  { %v421_v3 = vsub.f32 2.0, %v405_v57 }
  0x92   :  { %v437_v18 = vmul.f32 %v617_v11, %v421_v3 }
  0x94   :  { %v453_v23 = vmul.f32 %v601_v51, %v437_v18  ;;  %v469_v55 = vmul.f32 %v603_v26, %v437_v18 }
  0x96   :  { %485 = vst [vmem:[#allocation5 + $0x70] sm:$0xff] %v453_v23  ;;  %501 = vst [vmem:[#allocation5 + $0xf0] sm:$0xff] %v469_v55 }
  0x97   :  { %v619_v25 = vpop.eup %618 }
  0x98   :  { %v406_v54 = vmul.f32 %v619_v25, %v374_v49 }
  0x9a   :  { %v422_v8 = vsub.f32 2.0, %v406_v54 }
  0x9c   :  { %v438_v30 = vmul.f32 %v619_v25, %v422_v8 }
  0x9e   :  { %v454_v42 = vmul.f32 %v611_v17, %v438_v30  ;;  %v470_v9 = vmul.f32 %v613_v4, %v438_v30 }
  0xa0   :  { %486 = vst [vmem:[#allocation5 + $0x78] sm:$0xff] %v454_v42  ;;  %502 = vst [vmem:[#allocation5 + $0xf8] sm:$0xff] %v470_v9 }
  0xa1   :  { %651 = shalt.err (!%p648_p9)
}
  0xa2   :  { %514 = dma.vmem_to_hbm [thread:$0]  %s509_s13, 4096, %s1011_s1, [#allocation4], %s665_s9, %s665_s9, %s666_s10  }
  0xa3   :  { %662 = dma.done.wait [#allocation4], 4096  }
  0xa4   :  { %663 = vsyncadd [#allocation4], 4294963200 }
  0xa5   :  { %518 = vsyncpa [#allocation3], 1 }
  0xa6   :  { %519 = vsyncpa [#allocation4], 1 }

</bundles_post_ra>
